<compile_context>
chip_gen: v6e
topology: v6e:2x2x1
jax: 0.10.0
libtpu: 0.0.40
codegen_flags: <defaults>
</compile_context>

<pallas_src>
import math
import numpy as np
import jax
import jax.numpy as jnp
from jax.experimental import pallas as pl
from jax.experimental.pallas import tpu as pltpu

# ---- hyperparameters (small shapes consistent with the module's forward) ----
B = 2
LOOKBACK = 16          # in_channel / L
LOOKAHEAD = 8          # unused in the forward pass
HID = 32               # hid_dim
NUM_NODE = 8           # N
CHUNK = 8              # chunk_size (LOOKBACK % CHUNK == 0)
NUM_CHUNKS = LOOKBACK // CHUNK
TK = 8                 # top-k, fixed in MResBlock
PAD_F = 1
PAD_T = 1
RATIO = 0.3

F_FREQ = LOOKBACK // 2 + 1                      # rfft bins of x
FP_FREQ = (PAD_F + 1) * LOOKBACK // 2 + 1       # rfft bins of zero-padded x
NUM_SEL = math.floor(RATIO * LOOKBACK * PAD_T)  # TimeBlock selected samples
EPS = 1e-6


# ----------------------------- fused Pallas kernel ----------------------------
def _mres_kernel(x_ref,
                 fdft_ref, w1f_ref, b1f_ref, w2f_ref, b2f_ref, irii_ref,
                 w1t_ref, b1t_ref, w2t_ref, b2t_ref,
                 fo_ref, to_ref):
    f32 = jnp.float32
    bf16 = jnp.bfloat16

    x = x_ref[...]                                   # (L, B*N) f32
    x_bf = x.astype(bf16)                            # MXU operand

    # ------------------------------ Fourier branch ----------------------------
    # rfft(x) and rfft([x; zeros]) as ONE stacked DFT matmul:
    #   rows = [CR; -SR; CPR; -SPR]  ->  y = [xr; xi; xpr; xpi]
    y = jnp.dot(fdft_ref[...], x_bf, preferred_element_type=f32)  # (2F+2FP, BN)
    xr = y[0:F_FREQ]
    xi = y[F_FREQ:2 * F_FREQ]
    xpr = y[2 * F_FREQ:2 * F_FREQ + FP_FREQ]
    xpi = y[2 * F_FREQ + FP_FREQ:]
    amp = jnp.sqrt((xr + EPS) ** 2 + (xi + EPS) ** 2)              # (F, BN)
    amp_p = jnp.sqrt((xpr + EPS) ** 2 + (xpi + EPS) ** 2)          # (FP, BN)

    # top-k threshold = TK-th largest = (F-TK+1)-th smallest: peel from below
    # (F-TK = 1 here -> 2 cross-sublane min reductions instead of 7 max passes)
    n_drop = F_FREQ - TK
    if n_drop <= 0:
        amp_topk = amp
    else:
        low = jnp.min(amp, axis=0, keepdims=True)
        for _ in range(n_drop):
            low = jnp.min(jnp.where(amp > low, amp, jnp.inf),
                          axis=0, keepdims=True)
        amp_topk = jnp.where(amp >= low, amp, 0.0)

    # Attention_MLP gate: sigmoid(W2 relu(W1 [amp_topk; amp_p] + b1) + b2)
    gate = jnp.concatenate([amp_topk, amp_p], axis=0)              # (F+FP, BN)
    h = jnp.dot(w1f_ref[...], gate.astype(bf16),
                preferred_element_type=f32) + b1f_ref[...]
    h = jnp.maximum(h, 0.0)
    a = jax.nn.sigmoid(jnp.dot(w2f_ref[...], h.astype(bf16),
                               preferred_element_type=f32) + b2f_ref[...])
    # irfft(x_fft * a, n=L) as ONE stacked matmul with [IR | II]
    gated = jnp.concatenate([xr * a, xi * a], axis=0)              # (2F, BN)
    fo_ref[...] = jnp.dot(irii_ref[...], gated.astype(bf16),
                          preferred_element_type=f32)

    # -------------------------------- Time branch -----------------------------
    # first layer folded host-side: W1t = W1a@D1 + W1b + W1c@SSEL@INTERP
    ht = jnp.dot(w1t_ref[...], x_bf, preferred_element_type=f32) + b1t_ref[...]
    ht = jnp.maximum(ht, 0.0)
    at = jax.nn.sigmoid(jnp.dot(w2t_ref[...], ht.astype(bf16),
                                preferred_element_type=f32) + b2t_ref[...])
    to_ref[...] = x * at


# ---------------------------------- wrapper -----------------------------------
def _full_spec(shape):
    nd = len(shape)
    return pl.BlockSpec(shape, lambda i, _n=nd: (0,) * _n)


@jax.jit
def mresblock_forward(x, consts):
    Bsz, L, N = x.shape
    # lane axis carries B*N; time/frequency on sublanes
    x2d = jnp.transpose(x, (1, 0, 2)).reshape(L, Bsz * N)

    out2d = jax.ShapeDtypeStruct((L, Bsz * N), jnp.float32)
    out_spec = _full_spec((L, Bsz * N))
    fo2d, to2d = pl.pallas_call(
        _mres_kernel,
        out_shape=(out2d, out2d),
        grid=(1,),                                   # whole problem in one step
        in_specs=[_full_spec(x2d.shape)] + [_full_spec(c.shape) for c in consts],
        out_specs=(out_spec, out_spec),
        compiler_params=pltpu.CompilerParams(
            dimension_semantics=("arbitrary",)),
    )(x2d, *consts)

    fout = jnp.transpose(fo2d.reshape(L, Bsz, N), (1, 0, 2))
    tout = jnp.transpose(to2d.reshape(L, Bsz, N), (1, 0, 2))
    return fout, tout


# ------------------------- constant matrix builders ---------------------------
def _dft_mats(l_sig, n_fft):
    t = np.arange(l_sig)[None, :].astype(np.float64)
    f = np.arange(n_fft // 2 + 1)[:, None].astype(np.float64)
    ang = 2.0 * np.pi * f * t / n_fft
    return np.cos(ang).astype(np.float32), np.sin(ang).astype(np.float32)


def _irfft_mats(l_out):
    freq = l_out // 2 + 1
    t = np.arange(l_out)[:, None].astype(np.float64)
    f = np.arange(freq)[None, :].astype(np.float64)
    ang = 2.0 * np.pi * t * f / l_out
    w = np.full((1, freq), 2.0)
    w[0, 0] = 1.0
    if l_out % 2 == 0:
        w[0, -1] = 1.0
    ir = (w * np.cos(ang) / l_out).astype(np.float32)
    ii = (-w * np.sin(ang) / l_out).astype(np.float32)
    return ir, ii


# ---------------------------- pure-JAX reference ------------------------------
def fourier_ref(x, params):
    w1a, w1b, b1, w2, b2 = params
    x_fft = jnp.fft.rfft(x, axis=1)
    zero = jnp.zeros((x.shape[0], PAD_F * x.shape[1], x.shape[2]), x.dtype)
    x_p_fft = jnp.fft.rfft(jnp.concatenate([x, zero], axis=1), axis=1)
    amp_p = jnp.sqrt((x_p_fft.real + EPS) ** 2 + (x_p_fft.imag + EPS) ** 2)
    amp = jnp.sqrt((x_fft.real + EPS) ** 2 + (x_fft.imag + EPS) ** 2)
    thresh = -jnp.sort(-amp, axis=1)[:, TK - 1:TK, :]
    amp_topk = jnp.where(amp >= thresh, amp, 0.0)
    gate = jnp.concatenate([amp_topk, amp_p], axis=1)
    w1 = jnp.concatenate([w1a, w1b], axis=1)
    h = jnp.maximum(jnp.einsum('hg,bgn->bhn', w1, gate) + b1[None], 0.0)
    a = jax.nn.sigmoid(jnp.einsum('fh,bhn->bfn', w2, h) + b2[None])
    return jnp.fft.irfft(x_fft * a, n=x.shape[1], axis=1)


def time_ref(x, sel_idx, params):
    w1a, w1b, w1c, b1, w2, b2 = params
    x1 = x[:, ::NUM_CHUNKS, :]
    x_next = jnp.concatenate([x[:, 1:, :], x[:, -1:, :]], axis=1)
    x2i = 0.75 * x + 0.25 * x_next
    sel = x2i[:, sel_idx, :]
    h = (jnp.einsum('hc,bcn->bhn', w1a, x1)
         + jnp.einsum('hl,bln->bhn', w1b, x)
         + jnp.einsum('hs,bsn->bhn', w1c, sel) + b1[None])
    h = jnp.maximum(h, 0.0)
    a = jax.nn.sigmoid(jnp.einsum('lh,bhn->bln', w2, h) + b2[None])
    return x * a


# ----------------------------------- main --------------------------------------
if __name__ == "__main__":
    key = jax.random.PRNGKey(0)
    kx, *kw = jax.random.split(key, 12)
    x = jax.random.normal(kx, (B, LOOKBACK, NUM_NODE), dtype=jnp.float32)

    def lin(k, shape, scale=0.1):
        return scale * jax.random.normal(k, shape, dtype=jnp.float32)

    # FourierBlock DFT / inverse-DFT matrices
    CR, SR = _dft_mats(LOOKBACK, LOOKBACK)
    CPR, SPR = _dft_mats(LOOKBACK, (PAD_F + 1) * LOOKBACK)
    IR, II = _irfft_mats(LOOKBACK)

    # FourierBlock Attention_MLP params (g_in = F_FREQ + FP_FREQ, out = F_FREQ)
    f_w1a = lin(kw[0], (HID, F_FREQ))
    f_w1b = lin(kw[1], (HID, FP_FREQ))
    f_b1 = lin(kw[2], (HID, 1))
    f_w2 = lin(kw[3], (F_FREQ, HID))
    f_b2 = lin(kw[4], (F_FREQ, 1))
    f_params = (f_w1a, f_w1b, f_b1, f_w2, f_b2)

    # TimeBlock selection matrices
    D1 = np.zeros((CHUNK, LOOKBACK), np.float32)          # x[:, ::num_chunks, :]
    D1[np.arange(CHUNK), np.arange(CHUNK) * NUM_CHUNKS] = 1.0
    SHIFT = np.zeros((LOOKBACK, LOOKBACK), np.float32)
    SHIFT[np.arange(LOOKBACK), np.minimum(np.arange(LOOKBACK) + 1, LOOKBACK - 1)] = 1.0
    INTERP = 0.75 * np.eye(LOOKBACK, dtype=np.float32) + 0.25 * SHIFT  # x2[:, :, 1::2]
    # TODO(synk): torch.randperm-based random masking replaced by a fixed seeded choice
    rng = np.random.RandomState(0)
    sel_idx = np.sort(rng.permutation(LOOKBACK)[:NUM_SEL])
    SSEL = np.zeros((NUM_SEL, LOOKBACK), np.float32)
    SSEL[np.arange(NUM_SEL), sel_idx] = 1.0

    # TimeBlock Attention_MLP params (g_in = NUM_SEL + CHUNK + LOOKBACK, out = L)
    t_w1a = lin(kw[5], (HID, CHUNK))
    t_w1b = lin(kw[6], (HID, LOOKBACK))
    t_w1c = lin(kw[7], (HID, NUM_SEL))
    t_b1 = lin(kw[8], (HID, 1))
    t_w2 = lin(kw[9], (LOOKBACK, HID))
    t_b2 = lin(kw[10], (LOOKBACK, 1))
    t_params = (t_w1a, t_w1b, t_w1c, t_b1, t_w2, t_b2)

    # ---- fold constants for the fused kernel (bf16 MXU operands, f32 biases) ----
    bf16 = jnp.bfloat16
    FDFT = jnp.asarray(np.concatenate([CR, -SR, CPR, -SPR], axis=0)).astype(bf16)
    W1F = jnp.concatenate([f_w1a, f_w1b], axis=1).astype(bf16)
    IRII = jnp.asarray(np.concatenate([IR, II], axis=1)).astype(bf16)
    W1T = (f32_fold := (t_w1a @ jnp.asarray(D1) + t_w1b
                        + t_w1c @ jnp.asarray(SSEL @ INTERP))).astype(bf16)
    consts = (FDFT, W1F, f_b1, f_w2.astype(bf16), f_b2, IRII,
              W1T, t_b1, t_w2.astype(bf16), t_b2)

    fout, tout = mresblock_forward(x, consts)
    jax.block_until_ready((fout, tout))

    assert fout.shape == (B, LOOKBACK, NUM_NODE)
    assert tout.shape == (B, LOOKBACK, NUM_NODE)

    f_ref = fourier_ref(x, f_params)
    t_ref = time_ref(x, jnp.asarray(sel_idx), t_params)
    np.testing.assert_allclose(np.asarray(fout), np.asarray(f_ref), rtol=5e-2, atol=5e-2)
    np.testing.assert_allclose(np.asarray(tout), np.asarray(t_ref), rtol=5e-2, atol=5e-2)

    print("KERNEL_OK")
</pallas_src>

<mosaic_0001>
module attributes {stable_mosaic.version = 11 : i64} {
  func.func @_mres_kernel(%arg0: i32, %arg1: memref<16x16xf32, #tpu.memory_space<vmem>>, %arg2: memref<52x16xbf16, #tpu.memory_space<vmem>>, %arg3: memref<32x26xbf16, #tpu.memory_space<vmem>>, %arg4: memref<32x1xf32, #tpu.memory_space<vmem>>, %arg5: memref<9x32xbf16, #tpu.memory_space<vmem>>, %arg6: memref<9x1xf32, #tpu.memory_space<vmem>>, %arg7: memref<16x18xbf16, #tpu.memory_space<vmem>>, %arg8: memref<32x16xbf16, #tpu.memory_space<vmem>>, %arg9: memref<32x1xf32, #tpu.memory_space<vmem>>, %arg10: memref<16x32xbf16, #tpu.memory_space<vmem>>, %arg11: memref<16x1xf32, #tpu.memory_space<vmem>>, %arg12: memref<16x16xf32, #tpu.memory_space<vmem>>, %arg13: memref<16x16xf32, #tpu.memory_space<vmem>>) attributes {dimension_semantics = [#tpu.dimension_semantics<arbitrary>], iteration_bounds = array<i64: 1>, scalar_prefetch = 0 : i64, scratch_operands = 0 : i64, tpu.core_type = #tpu.core_type<tc>, window_params = [{pipeline_mode = #tpu.pipeline_mode<synchronous>, transform_indices = @transform_0, window_bounds = array<i64: 16, 16>}, {pipeline_mode = #tpu.pipeline_mode<synchronous>, transform_indices = @transform_1, window_bounds = array<i64: 52, 16>}, {pipeline_mode = #tpu.pipeline_mode<synchronous>, transform_indices = @transform_2, window_bounds = array<i64: 32, 26>}, {pipeline_mode = #tpu.pipeline_mode<synchronous>, transform_indices = @transform_3, window_bounds = array<i64: 32, 1>}, {pipeline_mode = #tpu.pipeline_mode<synchronous>, transform_indices = @transform_4, window_bounds = array<i64: 9, 32>}, {pipeline_mode = #tpu.pipeline_mode<synchronous>, transform_indices = @transform_5, window_bounds = array<i64: 9, 1>}, {pipeline_mode = #tpu.pipeline_mode<synchronous>, transform_indices = @transform_6, window_bounds = array<i64: 16, 18>}, {pipeline_mode = #tpu.pipeline_mode<synchronous>, transform_indices = @transform_7, window_bounds = array<i64: 32, 16>}, {pipeline_mode = #tpu.pipeline_mode<synchronous>, transform_indices = @transform_8, window_bounds = array<i64: 32, 1>}, {pipeline_mode = #tpu.pipeline_mode<synchronous>, transform_indices = @transform_9, window_bounds = array<i64: 16, 32>}, {pipeline_mode = #tpu.pipeline_mode<synchronous>, transform_indices = @transform_10, window_bounds = array<i64: 16, 1>}, {pipeline_mode = #tpu.pipeline_mode<synchronous>, transform_indices = @transform_11, window_bounds = array<i64: 16, 16>}, {pipeline_mode = #tpu.pipeline_mode<synchronous>, transform_indices = @transform_12, window_bounds = array<i64: 16, 16>}]} {
    %c0 = arith.constant 0 : index
    %c0_0 = arith.constant 0 : index
    %0 = vector.load %arg1[%c0, %c0_0] : memref<16x16xf32, #tpu.memory_space<vmem>>, vector<16x16xf32>
    %1 = arith.truncf %0 : vector<16x16xf32> to vector<16x16xbf16>
    %c0_1 = arith.constant 0 : index
    %c0_2 = arith.constant 0 : index
    %2 = vector.load %arg2[%c0_1, %c0_2] : memref<52x16xbf16, #tpu.memory_space<vmem>>, vector<52x16xbf16>
    %cst = arith.constant dense<0.000000e+00> : vector<52x16xf32>
    %3 = tpu.matmul %2, %1, %cst {dimension_numbers = #tpu.dot_dimension_numbers<[1], [0], [0], [1], [0, 0, 1, 1], [], []>} : vector<52x16xbf16>, vector<16x16xbf16>, vector<52x16xf32> -> vector<52x16xf32>
    %4 = vector.extract_strided_slice %3 {offsets = [0, 0], sizes = [9, 16], strides = [1, 1]} : vector<52x16xf32> to vector<9x16xf32>
    %5 = vector.extract_strided_slice %3 {offsets = [9, 0], sizes = [9, 16], strides = [1, 1]} : vector<52x16xf32> to vector<9x16xf32>
    %6 = vector.extract_strided_slice %3 {offsets = [18, 0], sizes = [17, 16], strides = [1, 1]} : vector<52x16xf32> to vector<17x16xf32>
    %7 = vector.extract_strided_slice %3 {offsets = [35, 0], sizes = [17, 16], strides = [1, 1]} : vector<52x16xf32> to vector<17x16xf32>
    %cst_3 = arith.constant 9.99999997E-7 : f32
    %8 = vector.broadcast %cst_3 : f32 to vector<9x16xf32>
    %9 = arith.addf %4, %8 : vector<9x16xf32>
    %10 = arith.mulf %9, %9 : vector<9x16xf32>
    %cst_4 = arith.constant 9.99999997E-7 : f32
    %11 = vector.broadcast %cst_4 : f32 to vector<9x16xf32>
    %12 = arith.addf %5, %11 : vector<9x16xf32>
    %13 = arith.mulf %12, %12 : vector<9x16xf32>
    %14 = arith.addf %10, %13 : vector<9x16xf32>
    %15 = math.sqrt %14 : vector<9x16xf32>
    %cst_5 = arith.constant 9.99999997E-7 : f32
    %16 = vector.broadcast %cst_5 : f32 to vector<17x16xf32>
    %17 = arith.addf %6, %16 : vector<17x16xf32>
    %18 = arith.mulf %17, %17 : vector<17x16xf32>
    %cst_6 = arith.constant 9.99999997E-7 : f32
    %19 = vector.broadcast %cst_6 : f32 to vector<17x16xf32>
    %20 = arith.addf %7, %19 : vector<17x16xf32>
    %21 = arith.mulf %20, %20 : vector<17x16xf32>
    %22 = arith.addf %18, %21 : vector<17x16xf32>
    %23 = math.sqrt %22 : vector<17x16xf32>
    %cst_7 = arith.constant dense<0x7F800000> : vector<16xf32>
    %24 = vector.multi_reduction <minimumf>, %15, %cst_7 [0] : vector<9x16xf32> to vector<16xf32>
    %25 = vector.shape_cast %24 : vector<16xf32> to vector<1x16xf32>
    %26 = vector.broadcast %25 : vector<1x16xf32> to vector<9x16xf32>
    %27 = arith.cmpf ogt, %15, %26 : vector<9x16xf32>
    %cst_8 = arith.constant 0x7F800000 : f32
    %28 = vector.broadcast %cst_8 : f32 to vector<9x16xf32>
    %29 = arith.select %27, %15, %28 : vector<9x16xi1>, vector<9x16xf32>
    %cst_9 = arith.constant dense<0x7F800000> : vector<16xf32>
    %30 = vector.multi_reduction <minimumf>, %29, %cst_9 [0] : vector<9x16xf32> to vector<16xf32>
    %31 = vector.shape_cast %30 : vector<16xf32> to vector<1x16xf32>
    %32 = vector.broadcast %31 : vector<1x16xf32> to vector<9x16xf32>
    %33 = arith.cmpf oge, %15, %32 : vector<9x16xf32>
    %cst_10 = arith.constant 0.000000e+00 : f32
    %34 = vector.broadcast %cst_10 : f32 to vector<9x16xf32>
    %35 = arith.select %33, %15, %34 : vector<9x16xi1>, vector<9x16xf32>
    %36 = tpu.concatenate %35, %23 in 0 : vector<9x16xf32>, vector<17x16xf32> -> vector<26x16xf32>
    %c0_11 = arith.constant 0 : index
    %c0_12 = arith.constant 0 : index
    %37 = vector.load %arg3[%c0_11, %c0_12] : memref<32x26xbf16, #tpu.memory_space<vmem>>, vector<32x26xbf16>
    %38 = arith.truncf %36 : vector<26x16xf32> to vector<26x16xbf16>
    %cst_13 = arith.constant dense<0.000000e+00> : vector<32x16xf32>
    %39 = tpu.matmul %37, %38, %cst_13 {dimension_numbers = #tpu.dot_dimension_numbers<[1], [0], [0], [1], [0, 0, 1, 1], [], []>} : vector<32x26xbf16>, vector<26x16xbf16>, vector<32x16xf32> -> vector<32x16xf32>
    %c0_14 = arith.constant 0 : index
    %c0_15 = arith.constant 0 : index
    %40 = vector.load %arg4[%c0_14, %c0_15] : memref<32x1xf32, #tpu.memory_space<vmem>>, vector<32x1xf32>
    %41 = vector.broadcast %40 : vector<32x1xf32> to vector<32x16xf32>
    %42 = arith.addf %39, %41 : vector<32x16xf32>
    %cst_16 = arith.constant 0.000000e+00 : f32
    %43 = vector.broadcast %cst_16 : f32 to vector<32x16xf32>
    %44 = arith.maximumf %42, %43 : vector<32x16xf32>
    %c0_17 = arith.constant 0 : index
    %c0_18 = arith.constant 0 : index
    %45 = vector.load %arg5[%c0_17, %c0_18] : memref<9x32xbf16, #tpu.memory_space<vmem>>, vector<9x32xbf16>
    %46 = arith.truncf %44 : vector<32x16xf32> to vector<32x16xbf16>
    %cst_19 = arith.constant dense<0.000000e+00> : vector<9x16xf32>
    %47 = tpu.matmul %45, %46, %cst_19 {dimension_numbers = #tpu.dot_dimension_numbers<[1], [0], [0], [1], [0, 0, 1, 1], [], []>} : vector<9x32xbf16>, vector<32x16xbf16>, vector<9x16xf32> -> vector<9x16xf32>
    %c0_20 = arith.constant 0 : index
    %c0_21 = arith.constant 0 : index
    %48 = vector.load %arg6[%c0_20, %c0_21] : memref<9x1xf32, #tpu.memory_space<vmem>>, vector<9x1xf32>
    %49 = vector.broadcast %48 : vector<9x1xf32> to vector<9x16xf32>
    %50 = arith.addf %47, %49 : vector<9x16xf32>
    %51 = arith.negf %50 : vector<9x16xf32>
    %52 = math.exp %51 : vector<9x16xf32>
    %cst_22 = arith.constant 1.000000e+00 : f32
    %53 = vector.broadcast %cst_22 : f32 to vector<9x16xf32>
    %54 = arith.addf %53, %52 : vector<9x16xf32>
    %55 = arith.divf %53, %54 : vector<9x16xf32>
    %56 = arith.mulf %4, %55 : vector<9x16xf32>
    %57 = arith.mulf %5, %55 : vector<9x16xf32>
    %58 = tpu.concatenate %56, %57 in 0 : vector<9x16xf32>, vector<9x16xf32> -> vector<18x16xf32>
    %c0_23 = arith.constant 0 : index
    %c0_24 = arith.constant 0 : index
    %59 = vector.load %arg7[%c0_23, %c0_24] : memref<16x18xbf16, #tpu.memory_space<vmem>>, vector<16x18xbf16>
    %60 = arith.truncf %58 : vector<18x16xf32> to vector<18x16xbf16>
    %cst_25 = arith.constant dense<0.000000e+00> : vector<16x16xf32>
    %61 = tpu.matmul %59, %60, %cst_25 {dimension_numbers = #tpu.dot_dimension_numbers<[1], [0], [0], [1], [0, 0, 1, 1], [], []>} : vector<16x18xbf16>, vector<18x16xbf16>, vector<16x16xf32> -> vector<16x16xf32>
    %c0_26 = arith.constant 0 : index
    %c0_27 = arith.constant 0 : index
    %62 = vector.load %arg12[%c0_26, %c0_27] : memref<16x16xf32, #tpu.memory_space<vmem>>, vector<16x16xf32>
    tpu.vector_store %arg12[%c0_26, %c0_27], %61 {strides = array<i32>} : memref<16x16xf32, #tpu.memory_space<vmem>>, vector<16x16xf32>,
    %c0_28 = arith.constant 0 : index
    %c0_29 = arith.constant 0 : index
    %63 = vector.load %arg8[%c0_28, %c0_29] : memref<32x16xbf16, #tpu.memory_space<vmem>>, vector<32x16xbf16>
    %cst_30 = arith.constant dense<0.000000e+00> : vector<32x16xf32>
    %64 = tpu.matmul %63, %1, %cst_30 {dimension_numbers = #tpu.dot_dimension_numbers<[1], [0], [0], [1], [0, 0, 1, 1], [], []>} : vector<32x16xbf16>, vector<16x16xbf16>, vector<32x16xf32> -> vector<32x16xf32>
    %c0_31 = arith.constant 0 : index
    %c0_32 = arith.constant 0 : index
    %65 = vector.load %arg9[%c0_31, %c0_32] : memref<32x1xf32, #tpu.memory_space<vmem>>, vector<32x1xf32>
    %66 = vector.broadcast %65 : vector<32x1xf32> to vector<32x16xf32>
    %67 = arith.addf %64, %66 : vector<32x16xf32>
    %cst_33 = arith.constant 0.000000e+00 : f32
    %68 = vector.broadcast %cst_33 : f32 to vector<32x16xf32>
    %69 = arith.maximumf %67, %68 : vector<32x16xf32>
    %c0_34 = arith.constant 0 : index
    %c0_35 = arith.constant 0 : index
    %70 = vector.load %arg10[%c0_34, %c0_35] : memref<16x32xbf16, #tpu.memory_space<vmem>>, vector<16x32xbf16>
    %71 = arith.truncf %69 : vector<32x16xf32> to vector<32x16xbf16>
    %cst_36 = arith.constant dense<0.000000e+00> : vector<16x16xf32>
    %72 = tpu.matmul %70, %71, %cst_36 {dimension_numbers = #tpu.dot_dimension_numbers<[1], [0], [0], [1], [0, 0, 1, 1], [], []>} : vector<16x32xbf16>, vector<32x16xbf16>, vector<16x16xf32> -> vector<16x16xf32>
    %c0_37 = arith.constant 0 : index
    %c0_38 = arith.constant 0 : index
    %73 = vector.load %arg11[%c0_37, %c0_38] : memref<16x1xf32, #tpu.memory_space<vmem>>, vector<16x1xf32>
    %74 = vector.broadcast %73 : vector<16x1xf32> to vector<16x16xf32>
    %75 = arith.addf %72, %74 : vector<16x16xf32>
    %76 = arith.negf %75 : vector<16x16xf32>
    %77 = math.exp %76 : vector<16x16xf32>
    %cst_39 = arith.constant 1.000000e+00 : f32
    %78 = vector.broadcast %cst_39 : f32 to vector<16x16xf32>
    %79 = arith.addf %78, %77 : vector<16x16xf32>
    %80 = arith.divf %78, %79 : vector<16x16xf32>
    %81 = arith.mulf %0, %80 : vector<16x16xf32>
    %c0_40 = arith.constant 0 : index
    %c0_41 = arith.constant 0 : index
    %82 = vector.load %arg13[%c0_40, %c0_41] : memref<16x16xf32, #tpu.memory_space<vmem>>, vector<16x16xf32>
    tpu.vector_store %arg13[%c0_40, %c0_41], %81 {strides = array<i32>} : memref<16x16xf32, #tpu.memory_space<vmem>>, vector<16x16xf32>,
    return
  }
  func.func @transform_0(%arg0: i32) -> (i32, i32) {
    %c0_i32 = arith.constant 0 : i32
    %c0_i32_0 = arith.constant 0 : i32
    %c0_i32_1 = arith.constant 0 : i32
    return %c0_i32, %c0_i32_0 : i32, i32
  }
  func.func @transform_1(%arg0: i32) -> (i32, i32) {
    %c0_i32 = arith.constant 0 : i32
    %c0_i32_0 = arith.constant 0 : i32
    %c0_i32_1 = arith.constant 0 : i32
    return %c0_i32, %c0_i32_0 : i32, i32
  }
  func.func @transform_2(%arg0: i32) -> (i32, i32) {
    %c0_i32 = arith.constant 0 : i32
    %c0_i32_0 = arith.constant 0 : i32
    %c0_i32_1 = arith.constant 0 : i32
    return %c0_i32, %c0_i32_0 : i32, i32
  }
  func.func @transform_3(%arg0: i32) -> (i32, i32) {
    %c0_i32 = arith.constant 0 : i32
    %c0_i32_0 = arith.constant 0 : i32
    %c0_i32_1 = arith.constant 0 : i32
    return %c0_i32, %c0_i32_0 : i32, i32
  }
  func.func @transform_4(%arg0: i32) -> (i32, i32) {
    %c0_i32 = arith.constant 0 : i32
    %c0_i32_0 = arith.constant 0 : i32
    %c0_i32_1 = arith.constant 0 : i32
    return %c0_i32, %c0_i32_0 : i32, i32
  }
  func.func @transform_5(%arg0: i32) -> (i32, i32) {
    %c0_i32 = arith.constant 0 : i32
    %c0_i32_0 = arith.constant 0 : i32
    %c0_i32_1 = arith.constant 0 : i32
    return %c0_i32, %c0_i32_0 : i32, i32
  }
  func.func @transform_6(%arg0: i32) -> (i32, i32) {
    %c0_i32 = arith.constant 0 : i32
    %c0_i32_0 = arith.constant 0 : i32
    %c0_i32_1 = arith.constant 0 : i32
    return %c0_i32, %c0_i32_0 : i32, i32
  }
  func.func @transform_7(%arg0: i32) -> (i32, i32) {
    %c0_i32 = arith.constant 0 : i32
    %c0_i32_0 = arith.constant 0 : i32
    %c0_i32_1 = arith.constant 0 : i32
    return %c0_i32, %c0_i32_0 : i32, i32
  }
  func.func @transform_8(%arg0: i32) -> (i32, i32) {
    %c0_i32 = arith.constant 0 : i32
    %c0_i32_0 = arith.constant 0 : i32
    %c0_i32_1 = arith.constant 0 : i32
    return %c0_i32, %c0_i32_0 : i32, i32
  }
  func.func @transform_9(%arg0: i32) -> (i32, i32) {
    %c0_i32 = arith.constant 0 : i32
    %c0_i32_0 = arith.constant 0 : i32
    %c0_i32_1 = arith.constant 0 : i32
    return %c0_i32, %c0_i32_0 : i32, i32
  }
  func.func @transform_10(%arg0: i32) -> (i32, i32) {
    %c0_i32 = arith.constant 0 : i32
    %c0_i32_0 = arith.constant 0 : i32
    %c0_i32_1 = arith.constant 0 : i32
    return %c0_i32, %c0_i32_0 : i32, i32
  }
  func.func @transform_11(%arg0: i32) -> (i32, i32) {
    %c0_i32 = arith.constant 0 : i32
    %c0_i32_0 = arith.constant 0 : i32
    %c0_i32_1 = arith.constant 0 : i32
    return %c0_i32, %c0_i32_0 : i32, i32
  }
  func.func @transform_12(%arg0: i32) -> (i32, i32) {
    %c0_i32 = arith.constant 0 : i32
    %c0_i32_0 = arith.constant 0 : i32
    %c0_i32_1 = arith.constant 0 : i32
    return %c0_i32, %c0_i32_0 : i32, i32
  }
}

</mosaic_0001>

<bundles_post_ra>
// kernel: mresblock_forward.1
= control target key start
LH: loop header
LB: loop body
LE: loop exit
PB: predicated region body
PF: predicated region fallthrough
CT: control target
= control target key end

     0   :  { %vm69_vm0 = vcmask 130048   ;;  %vm299_vm1 = vcmask 211968   ;;  %v840_v8 = vmov 0   ;;  %vm154_vm2 = vcmask 1046528   ;;  %s1062_s0 = inlined_call_operand.vmem [shape: f32[16,16], index: 0, kind: input, shape index: {}]   ;;  %s1063_s1 = inlined_call_operand.vmem [shape: bf16[52,16], index: 1, kind: input, shape index: {}]   ;;  %s1064_s2 = inlined_call_operand.vmem [shape: bf16[32,26], index: 2, kind: input, shape index: {}]   ;;  %s1065_s3 = inlined_call_operand.vmem [shape: f32[32,1], index: 3, kind: input, shape index: {}]   ;;  %s1066_s5 = inlined_call_operand.vmem [shape: f32[9,1], index: 5, kind: input, shape index: {}]   ;;  %s1067_s8 = inlined_call_operand.vmem [shape: f32[32,1], index: 8, kind: input, shape index: {}]   ;;  %s1068_s10 = inlined_call_operand.vmem [shape: f32[16,1], index: 10, kind: input, shape index: {}]   ;;  %s1069_s4 = inlined_call_operand.vmem [shape: bf16[9,32], index: 4, kind: input, shape index: {}]   ;;  %s1070_s7 = inlined_call_operand.vmem [shape: bf16[32,16], index: 7, kind: input, shape index: {}]   ;;  %s1071_s6 = inlined_call_operand.vmem [shape: bf16[16,18], index: 6, kind: input, shape index: {}]   ;;  %s1072_s9 = inlined_call_operand.vmem [shape: bf16[16,32], index: 9, kind: input, shape index: {}]   ;;  %s1073_s11 = inlined_call_operand.vmem [shape: f32[16,16], index: 11, kind: output, shape index: {0}]   ;;  %s1074_s12 = inlined_call_operand.vmem [shape: f32[16,16], index: 12, kind: output, shape index: {1}]  }
   0x1   :  { %v912_v0 = vld [vmem:[%s1062_s0] sm:$0xff]  ;;  %v917_v1 = vld [vmem:[%s1062_s0 + $0x8] sm:$0xff]  ;;  %v805_v5 = vld [vmem:[%s1063_s1 + $0x10] sm:$0xff]   ;;  %801 = vset.pattern.permute.xlu0 %v840_v8  ;;  %802 = vset.pattern.permute.xlu1 %v840_v8  ;;  %vm220_vm6 = vcmask 122880   ;;  %vm306_vm12 = vcmask 1044480  }
   0x2   :  { %v921_v2 = vpack.c.bf16 %v917_v1, %v912_v0  ;;  %v803_v3 = vld [vmem:[%s1063_s1] sm:$0xff]   ;;  %v804_v4 = vld [vmem:[%s1063_s1 + $0x8] sm:$0xff]   ;;  %v806_v6 = vld [vmem:[%s1063_s1 + $0x18] ss:$0 sps:$4 sm:$0x33]  }
   0x3   :  { %750 = vmatprep.mubr.msk.bf16.mxu0 %vm69_vm0, %v803_v3  ;;  %v807_v7 = vld [vmem:[%s1064_s2] sm:$0xff]   ;;  %v267_v9 = vld [vmem:[%s1065_s3 + $0x10] sm:$0xff]  ;;  %v268_v11 = vld [vmem:[%s1065_s3 + $0x18] sm:$0xff] }
   0x4   :  { %748 = vmatprep.subr.bf16.mxu0 %v921_v2  ;;  %762 = vmatprep.mubr.msk.bf16.mxu1 %vm299_vm1, %v807_v7  ;;  %v265_v10 = vld [vmem:[%s1065_s3] sm:$0xff]  ;;  %v266_v12 = vld [vmem:[%s1065_s3 + $0x8] sm:$0xff]  ;;  %v518_v15 = vld [vmem:[%s1067_s8 + $0x10] sm:$0xff] }
   0x5   :  { %749 = vmatpush3.bf16.msra.mxu0 %v921_v2  ;;  %281 = vperm.xlu0 %801, %v267_v9   ;;  %v367_v13 = vld [vmem:[%s1066_s5] sm:$0xff]  ;;  %v368_v14 = vld [vmem:[%s1066_s5 + $0x8] sm:$0x1]  ;;  %v519_v16 = vld [vmem:[%s1067_s8 + $0x18] sm:$0xff] }
   0x6   :  { %271 = vperm.xlu1 %802, %v265_v10   ;;  %v516_v17 = vld [vmem:[%s1067_s8] sm:$0xff]  ;;  %v517_v18 = vld [vmem:[%s1067_s8 + $0x8] sm:$0xff] }
   0x7   :  { %v613_v19 = vld [vmem:[%s1068_s10] sm:$0xff]  ;;  %v614_v20 = vld [vmem:[%s1068_s10 + $0x8] sm:$0xff] }
   0x8   :  { %751 = vmatmul.mubr.msk.bf16.vlgmr.msra.gmra.mxu0 %vm69_vm0, %v804_v4 }
   0x9   :  { %754 = vmatprep.mubr.msk.bf16.mxu0 %vm69_vm0, %v805_v5  ;;  %286 = vperm.xlu0 %801, %v268_v11  }
   0xa   :  { %276 = vperm.xlu1 %802, %v266_v12  }
   0xd   :  { %371 = vperm.xlu0 %801, %v367_v13  }
   0xe   :  { %376 = vperm.xlu1 %802, %v368_v14  }
  0x10   :  { %755 = vmatmul.mubr.msk.bf16.gmra.mxu0 %vm69_vm0, %v806_v6 }
  0x11   :  { %532 = vperm.xlu0 %801, %v518_v15  }
  0x12   :  { %537 = vperm.xlu1 %802, %v519_v16  }
  0x15   :  { %522 = vperm.xlu0 %801, %v516_v17  }
  0x16   :  { %527 = vperm.xlu1 %802, %v517_v18  }
  0x19   :  { %617 = vperm.xlu0 %801, %v613_v19  }
  0x1a   :  { %622 = vperm.xlu1 %802, %v614_v20  }
  0xc8   :  { %v981_v21 = vpop.f32.mrf.mxu0 }
  0xc9   :  { %v150_v22 = vadd.f32 1e-06, %v981_v21 }
  0xca   :  { %v984_v23 = vpop.f32.mrf.mxu0 }
  0xcb   :  { %v151_v25 = vmul.f32 %v150_v22, %v150_v22  ;;  %v146_v28 = vadd.f32 1e-06, %v984_v23 }
  0xcc   :  { %v753_v24 = vpop.f32.mrf.mxu0 }
  0xcd   :  { %v156_v30 = vrot.slane %v151_v25, 1  ;;  %v148_v38 = vmul.f32 %v146_v28, %v146_v28  ;;  %v176_v47 = vadd.f32 1e-06, %v753_v24 }
  0xce   :  { %v986_v26 = vpop.f32.mrf.mxu0 }
  0xcf   :  { %v147_v27 = vadd.f32 1e-06, %v986_v26  ;;  %v178_v50 = vmul.f32 %v176_v47, %v176_v47 }
  0xd0   :  { %v756_v29 = vpop.f32.mrf.mxu0 }
  0xd1   :  { %v149_v31 = vmul.f32 %v147_v27, %v147_v27  ;;  %v181_v32 = vadd.f32 1e-06, %v756_v29 }
  0xd2   :  { %v132_v33 = vpop.f32.mrf.mxu0 }
  0xd3   :  { %v155_v34 = vrot.slane %v149_v31, 1  ;;  %v161_v35 = vadd.f32 %v156_v30, %v149_v31  ;;  %v183_v36 = vmul.f32 %v181_v32, %v181_v32  ;;  %v177_v37 = vadd.f32 1e-06, %v132_v33 }
  0xd4   :  { %v757_v39 = vpop.f32.mrf.mxu0 }
  0xd5   :  { %814 = vrsqrt.f32 %v161_v35  ;;  %v190_v40 = vrot.slane %v183_v36, 1  ;;  %v179_v41 = vmul.f32 %v177_v37, %v177_v37  ;;  %v157_v42 = vsel %vm154_vm2, %v155_v34, %v156_v30 }
  0xd6   :  { %v135_v43 = vpop.f32.mrf.mxu0  ;;  %v160_v44 = vadd.f32 %v157_v42, %v148_v38  ;;  %vm171_vm3 = vcmp.eq.f32.partialorder %v161_v35, inf  ;;  %v174_v58 = vand.u32 2147483648, %v161_v35  ;;  %vm173_vm4 = vcmp.eq.f32.partialorder %v161_v35, 0.0 }
  0xd7   :  { %v197_v45 = vadd.f32 %v190_v40, %v179_v41  ;;  %v180_v46 = vadd.f32 1e-06, %v135_v43  ;;  %v187_v54 = vrot.slane %v179_v41, 1 }
  0xd8   :  { %816 = vrsqrt.f32 %v160_v44  ;;  %vm164_vm5 = vcmp.eq.f32.partialorder %v160_v44, inf  ;;  %v167_v62 = vand.u32 2147483648, %v160_v44  ;;  %vm166_vm7 = vcmp.eq.f32.partialorder %v160_v44, 0.0 }
  0xd9   :  { %818 = vrsqrt.f32 %v197_v45  ;;  %v182_v48 = vmul.f32 %v180_v46, %v180_v46  ;;  %vm214_vm8 = vcmp.eq.f32.partialorder %v197_v45, inf  ;;  %v217_v10 = vand.u32 2147483648, %v197_v45 }
  0xda   :  { %vm216_vm9 = vcmp.eq.f32.partialorder %v197_v45, 0.0 }
  0xdb   :  { %v188_v49 = vrot.slane %v182_v48, 1 }
  0xdd   :  { %v191_v51 = vsel %vm154_vm2, %v188_v49, %v190_v40  ;;  %v189_v60 = vsel %vm154_vm2, %v187_v54, %v188_v49  ;;  %v842_v54 = vmov 0.0  }
  0xde   :  { %v196_v52 = vadd.f32 %v191_v51, %v178_v50  ;;  %v195_v4 = vadd.f32 %v189_v60, %v151_v25  ;;  %774 = vmatprep.subr.bf16.mxu0 %v842_v54 }
  0xe0   :  { %820 = vrsqrt.f32 %v196_v52  ;;  %vm207_vm10 = vcmp.eq.f32.partialorder %v196_v52, inf  ;;  %v210_v16 = vand.u32 2147483648, %v196_v52  ;;  %vm209_vm11 = vcmp.eq.f32.partialorder %v196_v52, 0.0 }
  0xe1   :  { %822 = vrsqrt.f32 %v195_v4  ;;  %vm200_vm15 = vcmp.eq.f32.partialorder %v195_v4, inf  ;;  %v203_v42 = vand.u32 2147483648, %v195_v4 }
  0xe2   :  { %v815_v53 = vpop.eup %814 }
  0xe3   :  { %v170_v55 = vmul.f32 %v815_v53, %v161_v35  ;;  %v808_v53 = vld [vmem:[%s1064_s2 + $0x8] sm:$0xff]  }
  0xe5   :  { %v817_v56 = vpop.eup %816  ;;  %v172_v57 = vsel %vm171_vm3, %v161_v35, %v170_v55  ;;  %vm202_vm3 = vcmp.eq.f32.partialorder %v195_v4, 0.0  ;;  %v282_v55 = vpop.permute.xlu0 %281 }
  0xe6   :  { %v819_v59 = vpop.eup %818  ;;  %v163_v61 = vmul.f32 %v817_v56, %v160_v44  ;;  %v175_v63 = vsel %vm173_vm4, %v174_v58, %v172_v57  ;;  %vm257_vm4 = vcmask 1040384   ;;  %v272_v56 = vpop.permute.xlu1 %271 }
  0xe7   :  { %v213_v5 = vmul.f32 %v819_v59, %v197_v45  ;;  %v221_v8 = vsel %vm220_vm6, %v175_v63, inf }
  0xe8   :  { %v165_v3 = vsel %vm164_vm5, %v160_v44, %v163_v61 }
  0xe9   :  { %v168_v6 = vsel %vm166_vm7, %v167_v62, %v165_v3  ;;  %v215_v11 = vsel %vm214_vm8, %v197_v45, %v213_v5  ;;  %v287_v60 = vpop.permute.xlu0 %286 }
  0xea   :  { %v219_v7 = vsel %vm69_vm0, %v168_v6, inf  ;;  %v218_v17 = vsel %vm216_vm9, %v217_v10, %v215_v11  ;;  %vm843_vm9 = vmmov 0  }
  0xeb   :  { %v222_v9 = vmin.f32 %v219_v7, %v221_v8  ;;  %v252_v24 = vrot.slane %v218_v17, 1  ;;  %778 = vmatprep.mubr.msk.bf16.mxu0 %vm843_vm9, %v842_v54 }
  0xed   :  { %v223_v12 = vrot.slane %v222_v9, 4  ;;  %v821_v13 = vpop.eup %820 }
  0xee   :  { %v206_v14 = vmul.f32 %v821_v13, %v196_v52  ;;  %v823_v32 = vpop.eup %822  ;;  %v810_v13 = vld [vmem:[%s1070_s7] sm:$0xff]  }
  0xef   :  { %v224_v15 = vmin.f32 %v222_v9, %v223_v12  ;;  %v199_v38 = vmul.f32 %v823_v32, %v195_v4  ;;  %v809_v12 = vld [vmem:[%s1069_s4] sm:$0x1f]  }
  0xf0   :  { %v208_v18 = vsel %vm207_vm10, %v196_v52, %v206_v14  ;;  %v811_v14 = vld [vmem:[%s1070_s7 + $0x8] sm:$0xff]  }
  0xf1   :  { %v225_v19 = vrot.slane %v224_v15, 2  ;;  %v211_v20 = vsel %vm209_vm11, %v210_v16, %v208_v18  ;;  %v201_v41 = vsel %vm200_vm15, %v195_v4, %v199_v38 }
  0xf2   :  { %v250_v22 = vrot.slane %v211_v20, 1  ;;  %v204_v44 = vsel %vm202_vm3, %v203_v42, %v201_v41 }
  0xf3   :  { %v226_v25 = vmin.f32 %v224_v15, %v225_v19  ;;  %v249_v47 = vrot.slane %v204_v44, 1  ;;  %v372_v15 = vpop.permute.xlu0 %371 }
  0xf4   :  { %v253_v27 = vsel %vm154_vm2, %v250_v22, %v252_v24 }
  0xf5   :  { %v227_v28 = vrot.slane %v226_v25, 1  ;;  %v264_v29 = vpack.c.bf16 %v252_v24, %v253_v27  ;;  %v251_v50 = vsel %vm154_vm2, %v249_v47, %v250_v22  ;;  %vm462_vm2 = vcmask 146432  }
  0xf7   :  { %v228_v30 = vmin.f32 %v226_v25, %v227_v28  ;;  %796 = vmatprep.subr.msk.bf16.mxu1 %vm306_vm12, %v264_v29  ;;  %v308_v31 = vsel %vm306_vm12, %v264_v29, 0  ;;  %v533_v42 = vpop.permute.xlu0 %532 }
  0xf8   :  { %759 = vmatpush3.bf16.msra.mxu1 %v308_v31 }
  0xf9   :  { %vm229_vm13 = vcmp.gt.f32.partialorder %v168_v6, %v228_v30  ;;  %vm230_vm14 = vcmp.gt.f32.partialorder %v175_v63, %v228_v30 }
  0xfa   :  { %v231_v33 = vsel %vm229_vm13, %v168_v6, inf  ;;  %v232_v34 = vsel %vm230_vm14, %v175_v63, inf }
  0xfb   :  { %v233_v35 = vsel %vm69_vm0, %v231_v33, inf  ;;  %v234_v36 = vsel %vm220_vm6, %v232_v34, inf  ;;  %vm841_vm6 = vmmov 1  }
  0xfc   :  { %v235_v37 = vmin.f32 %v233_v35, %v234_v36 }
  0xfe   :  { %v236_v39 = vrot.slane %v235_v37, 4 }
 0x100   :  { %v237_v40 = vmin.f32 %v235_v37, %v236_v39 }
 0x102   :  { %v238_v43 = vrot.slane %v237_v40, 2 }
 0x104   :  { %v239_v45 = vmin.f32 %v237_v40, %v238_v43 }
 0x106   :  { %v240_v46 = vrot.slane %v239_v45, 1 }
 0x108   :  { %v241_v48 = vmin.f32 %v239_v45, %v240_v46 }
 0x10a   :  { %vm243_vm5 = vcmp.ge.f32.partialorder %v175_v63, %v241_v48  ;;  %vm242_vm7 = vcmp.ge.f32.partialorder %v168_v6, %v241_v48 }
 0x10b   :  { %v245_v49 = vsel %vm243_vm5, %v175_v63, 0.0  ;;  %vm708_vm8 = vmpackc.low %vm841_vm6, %vm242_vm7  ;;  %v277_v63 = vpop.permute.xlu1 %276 }
 0x10c   :  { %v258_v51 = vsel %vm257_vm4, %v245_v49, %v251_v50 }
 0x10d   :  { %v709_v52 = vpack.c.bf16 %v258_v51, %v168_v6 }
 0x10f   :  { %760 = vmatprep.subr.msk.bf16.mxu1 %vm708_vm8, %v709_v52  ;;  %v377_v20 = vpop.permute.xlu1 %376 }
 0x110   :  { %761 = vmatpush3.bf16.msk.msra.mxu1 %vm708_vm8, %v709_v52 }
 0x111   :  { %766 = vmatprep.subr.bf16.mxu1 %v842_v54 }
 0x113   :  { %763 = vmatmul.mubr.msk.bf16.vlgmr.msra.gmra.mxu1 %vm299_vm1, %v808_v53  ;;  %vm384_vm1 = vcmask 261120   ;;  %v538_v38 = vpop.permute.xlu1 %537 }
 0x114   :  { %770 = vmatprep.mubr.msk.bf16.mxu1 %vm843_vm9, %v842_v54 }
 0x117   :  { %v528_v51 = vpop.permute.xlu1 %527 }
 0x1d3   :  { %v764_v57 = vpop.f32.mrf.mxu1 }
 0x1d4   :  { %v353_v59 = vadd.f32 %v764_v57, %v282_v55  ;;  %v523_v55 = vpop.permute.xlu0 %522 }
 0x1d5   :  { %v344_v58 = vpop.f32.mrf.mxu1 }
 0x1d6   :  { %v361_v4 = vmax.f32 %v353_v59, 0.0  ;;  %v345_v5 = vadd.f32 %v344_v58, %v272_v56 }
 0x1d7   :  { %v765_v61 = vpop.f32.mrf.mxu1 }
 0x1d8   :  { %v356_v62 = vadd.f32 %v765_v61, %v287_v60  ;;  %v359_v10 = vmax.f32 %v345_v5, 0.0  ;;  %v813_v61 = vld [vmem:[%s1072_s9] sm:$0xff]  }
 0x1d9   :  { %v347_v3 = vpop.f32.mrf.mxu1 }
 0x1da   :  { %v362_v6 = vmax.f32 %v356_v62, 0.0  ;;  %v348_v7 = vadd.f32 %v347_v3, %v277_v63 }
 0x1dc   :  { %v366_v8 = vpack.c.bf16 %v362_v6, %v361_v4  ;;  %v360_v9 = vmax.f32 %v348_v7, 0.0  ;;  %v618_v4 = vpop.permute.xlu0 %617 }
 0x1de   :  { %767 = vmatpush3.bf16.msra.mxu1 %v366_v8  ;;  %v365_v11 = vpack.c.bf16 %v360_v9, %v359_v10  ;;  %v623_v9 = vpop.permute.xlu1 %622 }
 0x1df   :  { %768 = vmatprep.subr.bf16.mxu1 %v842_v54 }
 0x1e2   :  { %769 = vmatpush3.bf16.msra.mxu1 %v365_v11 }
 0x1e3   :  { %782 = vmatprep.subr.bf16.mxu1 %v921_v2 }
 0x1e5   :  { %771 = vmatmul.mubr.msk.bf16.vlgmr.msra.gmra.mxu1 %vm384_vm1, %v809_v12 }
 0x1e6   :  { %783 = vmatpush3.bf16.msra.mxu1 %v921_v2  ;;  %784 = vmatprep.mubr.msk.bf16.mxu1 %vm69_vm0, %v810_v13 }
 0x1ed   :  { %785 = vmatmul.mubr.msk.bf16.vlgmr.msra.gmra.mxu1 %vm69_vm0, %v811_v14 }
 0x2a5   :  { %v422_v16 = vpop.f32.mrf.mxu1 }
 0x2a6   :  { %v423_v17 = vadd.f32 %v422_v16, %v372_v15 }
 0x2a7   :  { %v772_v18 = vpop.f32.mrf.mxu1 }
 0x2a8   :  { %v715_v19 = vmul.f32 -1.442695, %v423_v17 }
 0x2a9   :  { %v425_v22 = vpop.f32.mrf.mxu1 }
 0x2aa   :  { %824 = vpow2.f32 %v715_v19  ;;  %v426_v24 = vadd.f32 %v425_v22, %v377_v20 }
 0x2ab   :  { %v773_v25 = vpop.f32.mrf.mxu1 }
 0x2ac   :  { %v716_v27 = vmul.f32 -1.442695, %v426_v24 }
 0x2ad   :  { %v786_v31 = vpop.f32.mrf.mxu1 }
 0x2ae   :  { %826 = vpow2.f32 %v716_v27  ;;  %v599_v49 = vadd.f32 %v786_v31, %v533_v42 }
 0x2af   :  { %v590_v34 = vpop.f32.mrf.mxu1 }
 0x2b0   :  { %v607_v56 = vmax.f32 %v599_v49, 0.0  ;;  %v591_v57 = vadd.f32 %v590_v34, %v523_v55 }
 0x2b1   :  { %v787_v39 = vpop.f32.mrf.mxu1 }
 0x2b2   :  { %v602_v45 = vadd.f32 %v787_v39, %v538_v38 }
 0x2b3   :  { %v593_v46 = vpop.f32.mrf.mxu1 }
 0x2b4   :  { %v594_v52 = vadd.f32 %v593_v46, %v528_v51 }
 0x2b6   :  { %v606_v59 = vmax.f32 %v594_v52, 0.0 }
 0x2b7   :  { %v825_v2 = vpop.eup %824 }
 0x2b8   :  { %v435_v28 = vadd.f32 1.0, %v825_v2 }
 0x2ba   :  { %828 = vrcp.f32 %v435_v28 }
 0x2bb   :  { %v827_v29 = vpop.eup %826 }
 0x2bc   :  { %v436_v30 = vadd.f32 1.0, %v827_v29 }
 0x2be   :  { %830 = vrcp.f32 %v436_v30 }
 0x2c7   :  { %v829_v32 = vpop.eup %828 }
 0x2c8   :  { %v445_v35 = vrot.slane %v829_v32, 7  ;;  %v441_v50 = vmul.f32 %v829_v32, %v984_v23  ;;  %v605_v23 = vmax.f32 %v591_v57, 0.0 }
 0x2ca   :  { %v450_v44 = vmul.f32 %v445_v35, %v986_v26  ;;  %v611_v60 = vpack.c.bf16 %v606_v59, %v605_v23 }
 0x2cb   :  { %v831_v33 = vpop.eup %830 }
 0x2cc   :  { %v446_v36 = vrot.slane %v831_v33, 7  ;;  %v442_v41 = vmul.f32 %v831_v33, %v986_v26  ;;  %v812_v26 = vld [vmem:[%s1071_s6] sm:$0xff]  }
 0x2ce   :  { %v447_v37 = vsel %vm257_vm4, %v445_v35, %v446_v36  ;;  %v452_v48 = vsel %vm257_vm4, %v442_v41, %v450_v44 }
 0x2cf   :  { %v451_v40 = vmul.f32 %v981_v21, %v447_v37  ;;  %v608_v21 = vmax.f32 %v602_v45, 0.0  ;;  %v455_v53 = vpack.c.bf16 %v452_v48, %v441_v50 }
 0x2d1   :  { %v456_v43 = vpack.c.bf16 %v451_v40, %v451_v40  ;;  %v612_v58 = vpack.c.bf16 %v608_v21, %v607_v56 }
 0x2d3   :  { %v467_v47 = vsel %vm257_vm4, %v456_v43, 0 }
 0x2d4   :  { %775 = vmatpush3.bf16.msra.mxu0 %v467_v47 }
 0x2d5   :  { %776 = vmatprep.subr.bf16.mxu0 %v842_v54 }
 0x2d8   :  { %777 = vmatpush3.bf16.msra.mxu0 %v455_v53 }
 0x2d9   :  { %788 = vmatprep.subr.bf16.mxu0 %v842_v54 }
 0x2db   :  { %779 = vmatmul.mubr.msk.bf16.vlgmr.msra.gmra.mxu0 %vm462_vm2, %v812_v26 }
 0x2dc   :  { %789 = vmatpush3.bf16.msra.mxu0 %v612_v58  ;;  %792 = vmatprep.mubr.msk.bf16.mxu0 %vm843_vm9, %v842_v54 }
 0x2dd   :  { %790 = vmatprep.subr.bf16.mxu0 %v842_v54 }
 0x2e0   :  { %791 = vmatpush3.bf16.msra.mxu0 %v611_v60 }
 0x2e3   :  { %793 = vmatmul.mubr.msk.bf16.vlgmr.msra.gmra.mxu0 %vm384_vm1, %v813_v61 }
 0x39b   :  { %v503_v62 = vpop.f32.mrf.mxu0 }
 0x39c   :  { %510 = vst.msk [vmem:[%s1073_s11] sm:$0xff] %vm69_vm0, %v503_v62 }
 0x39d   :  { %v780_v63 = vpop.f32.mrf.mxu0 }
 0x39f   :  { %v506_v3 = vpop.f32.mrf.mxu0 }
 0x3a0   :  { %511 = vst.msk [vmem:[%s1073_s11 + $0x8] sm:$0xff] %vm69_vm0, %v506_v3 }
 0x3a1   :  { %v781_v54 = vpop.f32.mrf.mxu0 }
 0x3a3   :  { %v667_v5 = vpop.f32.mrf.mxu0 }
 0x3a4   :  { %v668_v6 = vadd.f32 %v667_v5, %v618_v4 }
 0x3a5   :  { %v794_v7 = vpop.f32.mrf.mxu0 }
 0x3a6   :  { %v725_v8 = vmul.f32 -1.442695, %v668_v6 }
 0x3a7   :  { %v670_v10 = vpop.f32.mrf.mxu0 }
 0x3a8   :  { %832 = vpow2.f32 %v725_v8  ;;  %v671_v11 = vadd.f32 %v670_v10, %v623_v9 }
 0x3a9   :  { %v795_v12 = vpop.f32.mrf.mxu0 }
 0x3aa   :  { %v726_v13 = vmul.f32 -1.442695, %v671_v11 }
 0x3ac   :  { %834 = vpow2.f32 %v726_v13 }
 0x3b5   :  { %v833_v14 = vpop.eup %832 }
 0x3b6   :  { %v680_v15 = vadd.f32 1.0, %v833_v14 }
 0x3b8   :  { %836 = vrcp.f32 %v680_v15 }
 0x3b9   :  { %v835_v16 = vpop.eup %834 }
 0x3ba   :  { %v681_v17 = vadd.f32 1.0, %v835_v16 }
 0x3bc   :  { %838 = vrcp.f32 %v681_v17 }
 0x3c5   :  { %v837_v18 = vpop.eup %836 }
 0x3c6   :  { %v686_v19 = vmul.f32 %v837_v18, %v912_v0 }
 0x3c8   :  { %688 = vst.msk [vmem:[%s1074_s12] sm:$0xff] %vm69_vm0, %v686_v19 }
 0x3c9   :  { %v839_v20 = vpop.eup %838 }
 0x3ca   :  { %v687_v22 = vmul.f32 %v839_v20, %v917_v1 }
 0x3cc   :  { %689 = vst.msk [vmem:[%s1074_s12 + $0x8] sm:$0xff] %vm69_vm0, %v687_v22 }

</bundles_post_ra>
